<compile_context>
chip_gen: v7x
topology: tpu7x:2x2x1
jax: 0.10.0
libtpu: 0.0.40
codegen_flags: <defaults>
</compile_context>

<pallas_src>
import functools

import jax
import jax.numpy as jnp
from jax.experimental import pallas as pl
from jax.experimental.pallas import tpu as pltpu


# --------------------------------------------------------------------------
# Kernel
# --------------------------------------------------------------------------
def _hybrid_loss_kernel(x_ref, t_ref,
                        inter_ref, psum_ref, tsum_ref, focal_ref,
                        *, alpha, gamma, hard_labels, n_lane_chunks,
                        approx_recip):
    # Innermost (reduction) axis: zero the resident accumulators at k == 0.
    @pl.when(pl.program_id(2) == 0)
    def _():
        inter_ref[...] = jnp.zeros_like(inter_ref)
        psum_ref[...] = jnp.zeros_like(psum_ref)
        tsum_ref[...] = jnp.zeros_like(tsum_ref)
        focal_ref[...] = jnp.zeros_like(focal_ref)

    x = x_ref[...].astype(jnp.float32)
    t = t_ref[...].astype(jnp.float32)

    # Shared transcendentals (single EUP slot):
    #   e       = exp(-|x|)
    #   sigmoid = 1/(1+e)  (x >= 0)   or   e/(1+e)  (x < 0)
    #   bce     = max(x,0) - x*t + log1p(e)        (stable BCE-with-logits)
    e = jnp.exp(-jnp.abs(x))
    d = 1.0 + e
    if approx_recip:
        r0 = pl.reciprocal(d, approx=True)         # EUP vrcp (~2^-12 rel err)
        inv_1pe = r0 * (2.0 - d * r0)              # one Newton step -> ~1e-7
    else:
        inv_1pe = 1.0 / d
    probs = jnp.where(x >= 0.0, inv_1pe, e * inv_1pe)
    log_term = jnp.log1p(e)

    if hard_labels:
        # Targets are {0,1}: replace the p_t / alpha_t algebra with selects.
        t_pos = t >= 0.5
        bce = jnp.maximum(x, 0.0) - jnp.where(t_pos, x, 0.0) + log_term
        p_t = jnp.where(t_pos, probs, 1.0 - probs)
        alpha_t = jnp.where(t_pos, jnp.float32(alpha), jnp.float32(1.0 - alpha))
        inter_v = jnp.where(t_pos, probs, 0.0)
    else:
        bce = jnp.maximum(x, 0.0) - x * t + log_term
        p_t = probs * t + (1.0 - probs) * (1.0 - t)
        alpha_t = alpha * t + (1.0 - alpha) * (1.0 - t)
        inter_v = probs * t

    one_m_pt = 1.0 - p_t
    g = float(gamma)
    if g == 2.0:                                   # default: explicit square
        mod = one_m_pt * one_m_pt
    elif g == 1.0:
        mod = one_m_pt
    elif g == 0.0:
        mod = jnp.ones_like(one_m_pt)
    elif g.is_integer() and 0.0 < g <= 6.0:
        mod = one_m_pt
        for _ in range(int(g) - 1):
            mod = mod * one_m_pt
    else:
        mod = jnp.power(one_m_pt, g)               # non-integer gamma fallback
    focal = alpha_t * mod * bce

    def fold_lanes(v):
        # (row_tile, col_tile) -> (row_tile, 128): pure vreg-wise VPU adds,
        # slices are 128-lane-aligned so no relayout.
        acc = v[:, 0:128]
        for j in range(1, n_lane_chunks):
            acc = acc + v[:, j * 128:(j + 1) * 128]
        return acc

    # Lane-dense accumulation into the VMEM-resident output blocks.
    inter_ref[...] += fold_lanes(inter_v)
    psum_ref[...] += fold_lanes(probs)
    tsum_ref[...] += fold_lanes(t)
    focal_ref[...] += fold_lanes(focal)


# --------------------------------------------------------------------------
# Tiling helpers
# --------------------------------------------------------------------------
def _round_up(n, m):
    return ((n + m - 1) // m) * m


def _pick_row_tile(r_pad, sub, max_tile=256):
    """Largest divisor of r_pad that is a multiple of `sub` and <= max_tile,
    preferring an even (>= 2) number of row tiles for the parallel axis."""
    cands = [d for d in range(sub, min(r_pad, max_tile) + 1, sub)
             if r_pad % d == 0]
    if not cands:
        return r_pad
    even = [d for d in cands if (r_pad // d) >= 2 and (r_pad // d) % 2 == 0]
    multi = [d for d in cands if (r_pad // d) >= 2]
    if even:
        return max(even)
    if multi:
        return max(multi)
    return max(cands)


def _pick_col_tiling(s, cap):
    """Return (s_pad, col_tile): s_pad multiple of col_tile, col_tile a
    multiple of 128 and <= cap (roofline saturates by ~512-1024 lanes)."""
    cap = max(128, (cap // 128) * 128)
    s128 = _round_up(s, 128)
    if s128 <= cap:
        return s128, s128
    best = 128
    d = 256
    while d <= cap:
        if s128 % d == 0:
            best = d
        d += 128
    if best >= 512:
        return s128, best
    # Poor factorisation: pad further if the overhead is small (<= 12.5%).
    s_cap = _round_up(s, cap)
    if (s_cap - s128) * 8 <= s128:
        return s_cap, cap
    return s128, best


# --------------------------------------------------------------------------
# Wrapper
# --------------------------------------------------------------------------
def hybrid_dice_focal_loss(logits, targets, *,
                           dice_weight=0.7, focal_weight=0.3,
                           alpha=0.25, gamma=2.0, smooth=1e-6,
                           hard_labels=True, cast_targets_bf16=True,
                           approx_recip=True, max_col_tile=None):
    """logits, targets: (B, C, *spatial). Returns scalar f32 loss.

    hard_labels=True assumes {0,1} masks (exact w.r.t. the reference); set it
    to False for soft labels (also disables the bf16 target cast).
    """
    shape = logits.shape
    assert len(shape) >= 3, "expected (B, C, *spatial)"
    R = int(shape[0]) * int(shape[1])
    S = 1
    for s in shape[2:]:
        S *= int(s)

    x2 = logits.reshape(R, S)
    t2 = targets.reshape(R, S)

    xb = jnp.dtype(x2.dtype).itemsize
    # bf16 targets are lossless for hard {0,1} masks; only use them when R is
    # 16-aligned so the block respects the native bf16 (16,128) tile.
    # (int8 targets would cut v5e HBM bytes further but need 32-aligned rows.)
    use_bf16_t = (hard_labels and cast_targets_bf16
                  and jnp.dtype(t2.dtype).itemsize > 2 and R % 16 == 0)
    if use_bf16_t:
        t2 = t2.astype(jnp.bfloat16)
    tb = jnp.dtype(t2.dtype).itemsize

    sub = 8                                   # sublane granularity for blocks
    if xb == 2 or tb == 2:
        sub = 16
    if xb == 1 or tb == 1:
        sub = 32

    R_pad = _round_up(R, sub)
    row_tile = _pick_row_tile(R_pad, sub)

    # Column-tile cap: ~2048 lanes by default, clamped by an input-VMEM budget
    # that is safe on every generation (v7x has 64 MiB per TC).
    cap = 2048 if max_col_tile is None else int(max_col_tile)
    vmem_in_budget = 32 << 20
    max_cols_vmem = (vmem_in_budget // (2 * row_tile * (xb + tb))) // 128 * 128
    cap = max(128, min(cap, max(128, max_cols_vmem)))
    S_pad, col_tile = _pick_col_tiling(S, cap)

    # Pad (instead of a giant full-dim block): logit -30 / target 0 contribute
    # ~0 to every partial sum; padded rows are sliced away in the epilogue.
    if (R_pad, S_pad) != (R, S):
        x2 = jnp.pad(x2, ((0, R_pad - R), (0, S_pad - S)),
                     constant_values=-30.0)
        t2 = jnp.pad(t2, ((0, R_pad - R), (0, S_pad - S)),
                     constant_values=0.0)

    n_row = R_pad // row_tile
    n_col = S_pad // col_tile
    # If there is only one row tile, add a size-2 parallel split over the
    # reduction range so v7x's two TensorCores both get work.
    n_split = 2 if (n_row == 1 and n_col >= 2 and n_col % 2 == 0) else 1
    n_col_per = n_col // n_split
    n_lane_chunks = col_tile // 128

    kernel = functools.partial(
        _hybrid_loss_kernel,
        alpha=float(alpha), gamma=float(gamma),
        hard_labels=bool(hard_labels), n_lane_chunks=n_lane_chunks,
        approx_recip=bool(approx_recip))

    stat_shape = jax.ShapeDtypeStruct((n_split * R_pad, 128), jnp.float32)
    stat_spec = pl.BlockSpec((row_tile, 128),
                             lambda p, i, k: (p * n_row + i, 0))
    in_spec = pl.BlockSpec((row_tile, col_tile),
                           lambda p, i, k: (i, p * n_col_per + k))

    # VMEM limit: inputs (2 pipeline buffers each, already counted once),
    # 4 output accumulators (x2 buffers), margin; capped at 48 MiB for v7x.
    in_vmem = 2 * row_tile * col_tile * (xb + tb)
    out_vmem = 4 * 2 * row_tile * 128 * 4
    vmem_limit = int(min(48 << 20, max(16 << 20, in_vmem + out_vmem + (4 << 20))))

    inter, psum, tsum, fsum = pl.pallas_call(
        kernel,
        out_shape=(stat_shape,) * 4,
        grid_spec=pltpu.PrefetchScalarGridSpec(
            num_scalar_prefetch=0,
            grid=(n_split, n_row, n_col_per),
            in_specs=[in_spec, in_spec],
            out_specs=(stat_spec,) * 4,
        ),
        compiler_params=pltpu.CompilerParams(
            dimension_semantics=("parallel", "parallel", "arbitrary"),
            vmem_limit_bytes=vmem_limit),
    )(x2, t2)

    # Tiny plain-JAX epilogue: 128->1 lane reduce, split-sum, slice real rows.
    def _finish(a):
        a = a.reshape(n_split, R_pad, 128).sum(axis=(0, 2))
        return a[:R]

    inter_r = _finish(inter)
    union_r = _finish(psum) + _finish(tsum)
    dice = (2.0 * inter_r + smooth) / (union_r + smooth)
    d_loss = 1.0 - jnp.mean(dice)                     # mean over (B, C)
    f_loss = jnp.sum(_finish(fsum)) / float(R * S)    # mean over all elements
    return dice_weight * d_loss + focal_weight * f_loss


# --------------------------------------------------------------------------
# Pure-JAX reference (mirrors the PyTorch module)
# --------------------------------------------------------------------------
def _reference(logits, targets, *, dice_weight=0.7, focal_weight=0.3,
               alpha=0.25, gamma=2.0, smooth=1e-6):
    x = logits.astype(jnp.float32)
    t = targets.astype(jnp.float32)
    probs = jax.nn.sigmoid(x)
    dims = tuple(range(2, x.ndim))
    inter = jnp.sum(probs * t, axis=dims)
    union = jnp.sum(probs, axis=dims) + jnp.sum(t, axis=dims)
    dice = (2.0 * inter + smooth) / (union + smooth)
    d_loss = 1.0 - jnp.mean(dice)
    bce = jnp.maximum(x, 0.0) - x * t + jnp.log1p(jnp.exp(-jnp.abs(x)))
    p_t = probs * t + (1.0 - probs) * (1.0 - t)
    alpha_t = alpha * t + (1.0 - alpha) * (1.0 - t)
    f_loss = jnp.mean(alpha_t * jnp.power(1.0 - p_t, gamma) * bce)
    return dice_weight * d_loss + focal_weight * f_loss


if __name__ == "__main__":
    key = jax.random.PRNGKey(0)

    # Test 1: small aligned shape, single grid step.
    k1, k2 = jax.random.split(key)
    B, C, H, W = 2, 4, 16, 16
    logits = jax.random.normal(k1, (B, C, H, W), dtype=jnp.float32) * 2.0
    targets = jax.random.bernoulli(k2, p=0.4, shape=(B, C, H, W)).astype(jnp.float32)
    loss = jax.block_until_ready(hybrid_dice_focal_loss(logits, targets))
    ref = _reference(logits, targets)
    assert jnp.allclose(loss, ref, rtol=1e-5, atol=1e-6), (loss, ref)

    # Test 2: R = 16 (bf16 target path), forced 128-lane col tiles ->
    # exercises the size-2 parallel split and multi-step accumulation.
    k3, k4 = jax.random.split(k2)
    B2, C2, H2, W2 = 4, 4, 32, 32
    logits2 = jax.random.normal(k3, (B2, C2, H2, W2), dtype=jnp.float32) * 2.0
    targets2 = jax.random.bernoulli(k4, p=0.3, shape=(B2, C2, H2, W2)).astype(jnp.float32)
    loss2 = jax.block_until_ready(
        hybrid_dice_focal_loss(logits2, targets2, max_col_tile=128))
    ref2 = _reference(logits2, targets2)
    assert jnp.allclose(loss2, ref2, rtol=1e-5, atol=1e-6), (loss2, ref2)

    # Test 3: unaligned R and S -> padding path (no full-dim fallback block).
    k5, k6 = jax.random.split(k4)
    B3, C3, H3, W3 = 1, 3, 10, 14
    logits3 = jax.random.normal(k5, (B3, C3, H3, W3), dtype=jnp.float32) * 2.0
    targets3 = jax.random.bernoulli(k6, p=0.5, shape=(B3, C3, H3, W3)).astype(jnp.float32)
    loss3 = jax.block_until_ready(hybrid_dice_focal_loss(logits3, targets3))
    ref3 = _reference(logits3, targets3)
    assert jnp.allclose(loss3, ref3, rtol=1e-5, atol=1e-6), (loss3, ref3)

    print("KERNEL_OK")
</pallas_src>

<mosaic_0001>
module attributes {stable_mosaic.version = 11 : i64} {
  func.func @_hybrid_loss_kernel(%arg0: i32, %arg1: i32, %arg2: i32, %arg3: memref<8x256xf32, #tpu.memory_space<vmem>>, %arg4: memref<8x256xf32, #tpu.memory_space<vmem>>, %arg5: memref<8x128xf32, #tpu.memory_space<vmem>>, %arg6: memref<8x128xf32, #tpu.memory_space<vmem>>, %arg7: memref<8x128xf32, #tpu.memory_space<vmem>>, %arg8: memref<8x128xf32, #tpu.memory_space<vmem>>) attributes {dimension_semantics = [#tpu.dimension_semantics<parallel>, #tpu.dimension_semantics<parallel>, #tpu.dimension_semantics<arbitrary>], iteration_bounds = array<i64: 1, 1, 1>, scalar_prefetch = 0 : i64, scratch_operands = 0 : i64, tpu.core_type = #tpu.core_type<tc>, window_params = [{transform_indices = @transform_0, window_bounds = array<i64: 8, 256>}, {transform_indices = @transform_1, window_bounds = array<i64: 8, 256>}, {transform_indices = @transform_2, window_bounds = array<i64: 8, 128>}, {transform_indices = @transform_3, window_bounds = array<i64: 8, 128>}, {transform_indices = @transform_4, window_bounds = array<i64: 8, 128>}, {transform_indices = @transform_5, window_bounds = array<i64: 8, 128>}]} {
    %c0_i32 = arith.constant 0 : i32
    %0 = arith.cmpi eq, %arg2, %c0_i32 : i32
    %1 = arith.extui %0 : i1 to i32
    %c0_i32_0 = arith.constant 0 : i32
    %2 = arith.cmpi ne, %1, %c0_i32_0 : i32
    scf.if %2 {
      %cst_31 = arith.constant 0.000000e+00 : f32
      %66 = vector.broadcast %cst_31 : f32 to vector<8x128xf32>
      %c0_32 = arith.constant 0 : index
      %c0_33 = arith.constant 0 : index
      %67 = vector.load %arg5[%c0_32, %c0_33] : memref<8x128xf32, #tpu.memory_space<vmem>>, vector<8x128xf32>
      tpu.vector_store %arg5[%c0_32, %c0_33], %66 {strides = array<i32>} : memref<8x128xf32, #tpu.memory_space<vmem>>, vector<8x128xf32>,
      %cst_34 = arith.constant 0.000000e+00 : f32
      %68 = vector.broadcast %cst_34 : f32 to vector<8x128xf32>
      %c0_35 = arith.constant 0 : index
      %c0_36 = arith.constant 0 : index
      %69 = vector.load %arg6[%c0_35, %c0_36] : memref<8x128xf32, #tpu.memory_space<vmem>>, vector<8x128xf32>
      tpu.vector_store %arg6[%c0_35, %c0_36], %68 {strides = array<i32>} : memref<8x128xf32, #tpu.memory_space<vmem>>, vector<8x128xf32>,
      %cst_37 = arith.constant 0.000000e+00 : f32
      %70 = vector.broadcast %cst_37 : f32 to vector<8x128xf32>
      %c0_38 = arith.constant 0 : index
      %c0_39 = arith.constant 0 : index
      %71 = vector.load %arg7[%c0_38, %c0_39] : memref<8x128xf32, #tpu.memory_space<vmem>>, vector<8x128xf32>
      tpu.vector_store %arg7[%c0_38, %c0_39], %70 {strides = array<i32>} : memref<8x128xf32, #tpu.memory_space<vmem>>, vector<8x128xf32>,
      %cst_40 = arith.constant 0.000000e+00 : f32
      %72 = vector.broadcast %cst_40 : f32 to vector<8x128xf32>
      %c0_41 = arith.constant 0 : index
      %c0_42 = arith.constant 0 : index
      %73 = vector.load %arg8[%c0_41, %c0_42] : memref<8x128xf32, #tpu.memory_space<vmem>>, vector<8x128xf32>
      tpu.vector_store %arg8[%c0_41, %c0_42], %72 {strides = array<i32>} : memref<8x128xf32, #tpu.memory_space<vmem>>, vector<8x128xf32>,
    } else {
    }
    %c0 = arith.constant 0 : index
    %c0_1 = arith.constant 0 : index
    %3 = vector.load %arg3[%c0, %c0_1] : memref<8x256xf32, #tpu.memory_space<vmem>>, vector<8x256xf32>
    %c0_2 = arith.constant 0 : index
    %c0_3 = arith.constant 0 : index
    %4 = vector.load %arg4[%c0_2, %c0_3] : memref<8x256xf32, #tpu.memory_space<vmem>>, vector<8x256xf32>
    %5 = math.absf %3 : vector<8x256xf32>
    %cst = arith.constant 0.000000e+00 : f32
    %6 = vector.broadcast %cst : f32 to vector<8x256xf32>
    %7 = arith.subf %6, %5 : vector<8x256xf32>
    %8 = math.exp %7 : vector<8x256xf32>
    %cst_4 = arith.constant 1.000000e+00 : f32
    %9 = vector.broadcast %cst_4 : f32 to vector<8x256xf32>
    %10 = arith.addf %9, %8 : vector<8x256xf32>
    %11 = tpu.reciprocal %10 {approx = true} : vector<8x256xf32> -> vector<8x256xf32>
    %12 = arith.mulf %10, %11 : vector<8x256xf32>
    %cst_5 = arith.constant 2.000000e+00 : f32
    %13 = vector.broadcast %cst_5 : f32 to vector<8x256xf32>
    %14 = arith.subf %13, %12 : vector<8x256xf32>
    %15 = arith.mulf %11, %14 : vector<8x256xf32>
    %cst_6 = arith.constant 0.000000e+00 : f32
    %16 = vector.broadcast %cst_6 : f32 to vector<8x256xf32>
    %17 = arith.cmpf oge, %3, %16 : vector<8x256xf32>
    %18 = arith.mulf %8, %15 : vector<8x256xf32>
    %19 = arith.select %17, %15, %18 : vector<8x256xi1>, vector<8x256xf32>
    %20 = math.log1p %8 : vector<8x256xf32>
    %cst_7 = arith.constant 5.000000e-01 : f32
    %21 = vector.broadcast %cst_7 : f32 to vector<8x256xf32>
    %22 = arith.cmpf oge, %4, %21 : vector<8x256xf32>
    %cst_8 = arith.constant 0.000000e+00 : f32
    %23 = vector.broadcast %cst_8 : f32 to vector<8x256xf32>
    %24 = arith.maximumf %3, %23 : vector<8x256xf32>
    %cst_9 = arith.constant 0.000000e+00 : f32
    %25 = vector.broadcast %cst_9 : f32 to vector<8x256xf32>
    %26 = arith.select %22, %3, %25 : vector<8x256xi1>, vector<8x256xf32>
    %27 = arith.subf %24, %26 : vector<8x256xf32>
    %28 = arith.addf %27, %20 : vector<8x256xf32>
    %cst_10 = arith.constant 1.000000e+00 : f32
    %29 = vector.broadcast %cst_10 : f32 to vector<8x256xf32>
    %30 = arith.subf %29, %19 : vector<8x256xf32>
    %31 = arith.select %22, %19, %30 : vector<8x256xi1>, vector<8x256xf32>
    %cst_11 = arith.constant 2.500000e-01 : f32
    %cst_12 = arith.constant 7.500000e-01 : f32
    %32 = vector.broadcast %cst_11 : f32 to vector<8x256xf32>
    %33 = vector.broadcast %cst_12 : f32 to vector<8x256xf32>
    %34 = arith.select %22, %32, %33 : vector<8x256xi1>, vector<8x256xf32>
    %cst_13 = arith.constant 0.000000e+00 : f32
    %35 = vector.broadcast %cst_13 : f32 to vector<8x256xf32>
    %36 = arith.select %22, %19, %35 : vector<8x256xi1>, vector<8x256xf32>
    %cst_14 = arith.constant 1.000000e+00 : f32
    %37 = vector.broadcast %cst_14 : f32 to vector<8x256xf32>
    %38 = arith.subf %37, %31 : vector<8x256xf32>
    %39 = arith.mulf %38, %38 : vector<8x256xf32>
    %40 = arith.mulf %34, %39 : vector<8x256xf32>
    %41 = arith.mulf %40, %28 : vector<8x256xf32>
    %c0_15 = arith.constant 0 : index
    %c0_16 = arith.constant 0 : index
    %42 = vector.load %arg5[%c0_15, %c0_16] : memref<8x128xf32, #tpu.memory_space<vmem>>, vector<8x128xf32>
    %43 = vector.extract_strided_slice %36 {offsets = [0, 0], sizes = [8, 128], strides = [1, 1]} : vector<8x256xf32> to vector<8x128xf32>
    %44 = vector.extract_strided_slice %36 {offsets = [0, 128], sizes = [8, 128], strides = [1, 1]} : vector<8x256xf32> to vector<8x128xf32>
    %45 = arith.addf %43, %44 : vector<8x128xf32>
    %46 = arith.addf %42, %45 : vector<8x128xf32>
    %c0_17 = arith.constant 0 : index
    %c0_18 = arith.constant 0 : index
    %47 = vector.load %arg5[%c0_17, %c0_18] : memref<8x128xf32, #tpu.memory_space<vmem>>, vector<8x128xf32>
    tpu.vector_store %arg5[%c0_17, %c0_18], %46 {strides = array<i32>} : memref<8x128xf32, #tpu.memory_space<vmem>>, vector<8x128xf32>,
    %c0_19 = arith.constant 0 : index
    %c0_20 = arith.constant 0 : index
    %48 = vector.load %arg6[%c0_19, %c0_20] : memref<8x128xf32, #tpu.memory_space<vmem>>, vector<8x128xf32>
    %49 = vector.extract_strided_slice %19 {offsets = [0, 0], sizes = [8, 128], strides = [1, 1]} : vector<8x256xf32> to vector<8x128xf32>
    %50 = vector.extract_strided_slice %19 {offsets = [0, 128], sizes = [8, 128], strides = [1, 1]} : vector<8x256xf32> to vector<8x128xf32>
    %51 = arith.addf %49, %50 : vector<8x128xf32>
    %52 = arith.addf %48, %51 : vector<8x128xf32>
    %c0_21 = arith.constant 0 : index
    %c0_22 = arith.constant 0 : index
    %53 = vector.load %arg6[%c0_21, %c0_22] : memref<8x128xf32, #tpu.memory_space<vmem>>, vector<8x128xf32>
    tpu.vector_store %arg6[%c0_21, %c0_22], %52 {strides = array<i32>} : memref<8x128xf32, #tpu.memory_space<vmem>>, vector<8x128xf32>,
    %c0_23 = arith.constant 0 : index
    %c0_24 = arith.constant 0 : index
    %54 = vector.load %arg7[%c0_23, %c0_24] : memref<8x128xf32, #tpu.memory_space<vmem>>, vector<8x128xf32>
    %55 = vector.extract_strided_slice %4 {offsets = [0, 0], sizes = [8, 128], strides = [1, 1]} : vector<8x256xf32> to vector<8x128xf32>
    %56 = vector.extract_strided_slice %4 {offsets = [0, 128], sizes = [8, 128], strides = [1, 1]} : vector<8x256xf32> to vector<8x128xf32>
    %57 = arith.addf %55, %56 : vector<8x128xf32>
    %58 = arith.addf %54, %57 : vector<8x128xf32>
    %c0_25 = arith.constant 0 : index
    %c0_26 = arith.constant 0 : index
    %59 = vector.load %arg7[%c0_25, %c0_26] : memref<8x128xf32, #tpu.memory_space<vmem>>, vector<8x128xf32>
    tpu.vector_store %arg7[%c0_25, %c0_26], %58 {strides = array<i32>} : memref<8x128xf32, #tpu.memory_space<vmem>>, vector<8x128xf32>,
    %c0_27 = arith.constant 0 : index
    %c0_28 = arith.constant 0 : index
    %60 = vector.load %arg8[%c0_27, %c0_28] : memref<8x128xf32, #tpu.memory_space<vmem>>, vector<8x128xf32>
    %61 = vector.extract_strided_slice %41 {offsets = [0, 0], sizes = [8, 128], strides = [1, 1]} : vector<8x256xf32> to vector<8x128xf32>
    %62 = vector.extract_strided_slice %41 {offsets = [0, 128], sizes = [8, 128], strides = [1, 1]} : vector<8x256xf32> to vector<8x128xf32>
    %63 = arith.addf %61, %62 : vector<8x128xf32>
    %64 = arith.addf %60, %63 : vector<8x128xf32>
    %c0_29 = arith.constant 0 : index
    %c0_30 = arith.constant 0 : index
    %65 = vector.load %arg8[%c0_29, %c0_30] : memref<8x128xf32, #tpu.memory_space<vmem>>, vector<8x128xf32>
    tpu.vector_store %arg8[%c0_29, %c0_30], %64 {strides = array<i32>} : memref<8x128xf32, #tpu.memory_space<vmem>>, vector<8x128xf32>,
    return
  }
  func.func @transform_0(%arg0: i32, %arg1: i32, %arg2: i32) -> (i32, i32) {
    %c1_i32 = arith.constant 1 : i32
    %0 = arith.muli %arg0, %c1_i32 : i32
    %1 = arith.addi %0, %arg2 : i32
    %c0_i32 = arith.constant 0 : i32
    return %arg1, %1 : i32, i32
  }
  func.func @transform_1(%arg0: i32, %arg1: i32, %arg2: i32) -> (i32, i32) {
    %c1_i32 = arith.constant 1 : i32
    %0 = arith.muli %arg0, %c1_i32 : i32
    %1 = arith.addi %0, %arg2 : i32
    %c0_i32 = arith.constant 0 : i32
    return %arg1, %1 : i32, i32
  }
  func.func @transform_2(%arg0: i32, %arg1: i32, %arg2: i32) -> (i32, i32) {
    %c1_i32 = arith.constant 1 : i32
    %0 = arith.muli %arg0, %c1_i32 : i32
    %1 = arith.addi %0, %arg1 : i32
    %c0_i32 = arith.constant 0 : i32
    %c0_i32_0 = arith.constant 0 : i32
    return %1, %c0_i32 : i32, i32
  }
  func.func @transform_3(%arg0: i32, %arg1: i32, %arg2: i32) -> (i32, i32) {
    %c1_i32 = arith.constant 1 : i32
    %0 = arith.muli %arg0, %c1_i32 : i32
    %1 = arith.addi %0, %arg1 : i32
    %c0_i32 = arith.constant 0 : i32
    %c0_i32_0 = arith.constant 0 : i32
    return %1, %c0_i32 : i32, i32
  }
  func.func @transform_4(%arg0: i32, %arg1: i32, %arg2: i32) -> (i32, i32) {
    %c1_i32 = arith.constant 1 : i32
    %0 = arith.muli %arg0, %c1_i32 : i32
    %1 = arith.addi %0, %arg1 : i32
    %c0_i32 = arith.constant 0 : i32
    %c0_i32_0 = arith.constant 0 : i32
    return %1, %c0_i32 : i32, i32
  }
  func.func @transform_5(%arg0: i32, %arg1: i32, %arg2: i32) -> (i32, i32) {
    %c1_i32 = arith.constant 1 : i32
    %0 = arith.muli %arg0, %c1_i32 : i32
    %1 = arith.addi %0, %arg1 : i32
    %c0_i32 = arith.constant 0 : i32
    %c0_i32_0 = arith.constant 0 : i32
    return %1, %c0_i32 : i32, i32
  }
}

</mosaic_0001>

<bundles_post_ra>
// kernel: tpu_custom_call.1
= control target key start
LH: loop header
LB: loop body
LE: loop exit
PB: predicated region body
PF: predicated region fallthrough
CT: control target
= control target key end

     0   :  { %11 = vsyncpa [#allocation3], 0  ;;  %s560_s0 = inlined_call_operand.hbm [shape: f32[8,256], index: 0, kind: input, shape index: {}]   ;;  %s561_s1 = inlined_call_operand.hbm [shape: f32[8,256], index: 1, kind: input, shape index: {}]   ;;  %s562_s2 = inlined_call_operand.hbm [shape: f32[8,128], index: 2, kind: output, shape index: {0}]   ;;  %s563_s3 = inlined_call_operand.hbm [shape: f32[8,128], index: 3, kind: output, shape index: {1}]   ;;  %s564_s4 = inlined_call_operand.hbm [shape: f32[8,128], index: 4, kind: output, shape index: {2}]   ;;  %s565_s5 = inlined_call_operand.hbm [shape: f32[8,128], index: 5, kind: output, shape index: {3}]  }
   0x1   :  { %12 = vsyncpa [#allocation6], 0 }
   0x2   :  { %13 = vsyncpa [#allocation4], 0 }
   0x3   :  { %14 = vsyncpa [#allocation9], 0 }
   0x4   :  { %15 = vsyncpa [#allocation12], 0  ;;  %s385_s18 = smov [#allocation2]   ;;  %s386_s20 = smov [#allocation5]  }
   0x5   :  { %s26_s19 = sshll.u32 %s385_s18, 4  ;;  %s40_s21 = sshll.u32 %s386_s20, 4  ;;  %s27_s19 = int_to_ptr.vmem [resolvable:$true] %s26_s19  ;;  %s41_s21 = int_to_ptr.vmem [resolvable:$true] %s40_s21 }
   0x6   :  { %s243_s24 = scalar_lea.hbm %s560_s0, 256 }
   0x7   :  { %p244_p0 = scmp.ne.s32.totalorder %s560_s0, %s243_s24  ;;  %p247_p1 = scmp.lt.u32.totalorder %s243_s24, %s560_s0 }
   0x9   :  { %p249_p2 = pnand %p247_p1, %p244_p0 }
   0xb   :  { %252 = shalt.err (!%p249_p2)
}
   0xc   :  { %s253_s29 = scalar_lea.vmem %s27_s19, 256  ;;  %p258_p4 = scmp.lt.s32.totalorder %s27_s19, %s27_s19 }
   0xd   :  { %p254_p3 = scmp.ne.s32.totalorder %s27_s19, %s253_s29  ;;  %p259_p5 = scmp.lt.s32.totalorder %s253_s29, %s253_s29 }
   0xf   :  { %p260_p6 = por %p259_p5, %p258_p4 }
  0x11   :  { %p261_p7 = pnand %p260_p6, %p254_p3 }
  0x13   :  { %264 = shalt.err (!%p261_p7)
}
  0x14   :  { %29 = dma.hbm_to_vmem [thread:$0]  %s560_s0, 256, %s27_s19, [#allocation3]  }
  0x15   :  { %s265_s9 = scalar_lea.hbm %s561_s1, 256 }
  0x16   :  { %p266_p8 = scmp.ne.s32.totalorder %s561_s1, %s265_s9  ;;  %p269_p9 = scmp.lt.u32.totalorder %s265_s9, %s561_s1 }
  0x18   :  { %p271_p10 = pnand %p269_p9, %p266_p8 }
  0x1a   :  { %274 = shalt.err (!%p271_p10)
}
  0x1b   :  { %s275_s14 = scalar_lea.vmem %s41_s21, 256  ;;  %p280_p12 = scmp.lt.s32.totalorder %s41_s21, %s41_s21 }
  0x1c   :  { %p276_p11 = scmp.ne.s32.totalorder %s41_s21, %s275_s14  ;;  %p281_p13 = scmp.lt.s32.totalorder %s275_s14, %s275_s14 }
  0x1e   :  { %p282_p0 = por %p281_p13, %p280_p12 }
  0x20   :  { %p283_p1 = pnand %p282_p0, %p276_p11 }
  0x22   :  { %286 = shalt.err (!%p283_p1)
}
  0x23   :  { %43 = dma.hbm_to_vmem [thread:$0]  %s561_s1, 256, %s41_s21, [#allocation6]  }
  0x24   :  { %375 = dma.done.wait [#allocation3], 256  }
  0x25   :  { %376 = vsyncadd [#allocation3], 4294967040 }
  0x26   :  { %377 = dma.done.wait [#allocation6], 256  }
  0x27   :  { %378 = vsyncadd [#allocation6], 4294967040  ;;  %v446_v0 = vld [vmem:[#allocation2] sm:$0xff]  ;;  %v448_v1 = vld [vmem:[#allocation2 + $0x8] sm:$0xff]  ;;  %s387_s1 = smov [#allocation8]   ;;  %s388_s17 = smov [#allocation7]  }
  0x28   :  { %v70_v2 = vand.u32 2147483647, %v446_v0  ;;  %v71_v3 = vand.u32 2147483647, %v448_v1  ;;  %v452_v4 = vld [vmem:[#allocation5] sm:$0xff]  ;;  %v454_v5 = vld [vmem:[#allocation5 + $0x8] sm:$0xff] }
  0x29   :  { %v147_v8 = vadd.f32 %v454_v5, %v452_v4  ;;  %vm88_vm0 = vcmp.ge.f32.partialorder %v446_v0, 0.0  ;;  %vm89_vm1 = vcmp.ge.f32.partialorder %v448_v1, 0.0  ;;  %vm112_vm2 = vcmp.ge.f32.partialorder %v452_v4, 0.5  ;;  %s176_s16 = sshll.u32 %s387_s1, 4  ;;  %s163_s18 = sshll.u32 %s388_s17, 4  ;;  %s177_s16 = int_to_ptr.vmem [resolvable:$true] %s176_s16  ;;  %s496_s18 = int_to_ptr.vmem [resolvable:$true] %s163_s18 }
  0x2a   :  { %v72_v6 = vsub.f32 0.0, %v70_v2  ;;  %v73_v7 = vsub.f32 0.0, %v71_v3  ;;  %v114_v31 = vmax.f32 %v446_v0, 0.0  ;;  %vm113_vm3 = vcmp.ge.f32.partialorder %v454_v5, 0.5  ;;  %s389_s19 = smov [#allocation10]   ;;  %s287_s21 = scalar_lea.vmem %s177_s16, 128 }
  0x2b   :  { %149 = vst [vmem:[#allocation10] sm:$0xff] %v147_v8  ;;  %v115_v33 = vmax.f32 %v448_v1, 0.0  ;;  %v116_v34 = vsel %vm112_vm2, %v446_v0, 0.0  ;;  %v117_v38 = vsel %vm113_vm3, %v448_v1, 0.0  ;;  %s189_s20 = sshll.u32 %s389_s19, 4  ;;  %v390_v58 = vmov 0.75   ;;  %p288_p2 = scmp.ne.s32.totalorder %s177_s16, %s287_s21  ;;  %s500_s20 = int_to_ptr.vmem [resolvable:$true] %s189_s20 }
  0x2c   :  { %v74_v9 = vmul.f32 1.442695, %v72_v6  ;;  %v76_v10 = vmul.f32 1.442695, %v73_v7  ;;  %v118_v50 = vsub.f32 %v114_v31, %v116_v34  ;;  %v126_v59 = vsel %vm112_vm2, 0.25, %v390_v58  ;;  %p292_p3 = scmp.lt.s32.totalorder %s177_s16, %s177_s16  ;;  %p293_p4 = scmp.lt.s32.totalorder %s287_s21, %s287_s21 }
  0x2d   :  { %v119_v53 = vsub.f32 %v115_v33, %v117_v38  ;;  %v127_v62 = vsel %vm113_vm3, 0.25, %v390_v58 }
  0x2e   :  { %231 = vpow2.f32 %v74_v9  ;;  %p294_p5 = por %p293_p4, %p292_p3 }
  0x2f   :  { %233 = vpow2.f32 %v76_v10 }
  0x30   :  { %p295_p6 = pnand %p294_p5, %p288_p2 }
  0x38   :  { %v232_v11 = vpop.eup %231 }
  0x39   :  { %v234_v12 = vpop.eup %233  ;;  %v78_v13 = vadd.f32 1.0, %v232_v11  ;;  %v97_v16 = vmul.f32 -0.5, %v232_v11  ;;  %v100_v26 = vand.u32 2147483647, %v232_v11 }
  0x3a   :  { %v79_v14 = vadd.f32 1.0, %v234_v12  ;;  %v106_v19 = vmul.f32 -0.5, %v234_v12  ;;  %v109_v30 = vand.u32 2147483647, %v234_v12 }
  0x3b   :  { %235 = vrcp.f32 %v78_v13  ;;  %v98_v23 = vadd.f32 1.0, %v97_v16  ;;  %vm472_vm4 = vcmp.lt.f32.partialorder %v100_v26, 0.0004427343 }
  0x3c   :  { %237 = vrcp.f32 %v79_v14  ;;  %v107_v27 = vadd.f32 1.0, %v106_v19  ;;  %vm480_vm5 = vcmp.lt.f32.partialorder %v109_v30, 0.0004427343 }
  0x3d   :  { %239 = vlog2.f32 %v78_v13  ;;  %v99_v37 = vmul.f32 %v232_v11, %v98_v23 }
  0x3e   :  { %241 = vlog2.f32 %v79_v14  ;;  %v108_v42 = vmul.f32 %v234_v12, %v107_v27 }
  0x45   :  { %v236_v15 = vpop.eup %235 }
  0x46   :  { %v238_v17 = vpop.eup %237  ;;  %v82_v18 = vmul.f32 %v236_v15, %v78_v13 }
  0x47   :  { %v83_v20 = vmul.f32 %v238_v17, %v79_v14  ;;  %v240_v24 = vpop.eup %239 }
  0x48   :  { %v84_v21 = vsub.f32 2.0, %v82_v18  ;;  %v242_v28 = vpop.eup %241  ;;  %v96_v36 = vmul.f32 0.6931472, %v240_v24 }
  0x49   :  { %v85_v22 = vsub.f32 2.0, %v83_v20  ;;  %v105_v41 = vmul.f32 0.6931472, %v242_v28 }
  0x4a   :  { %v86_v25 = vmul.f32 %v236_v15, %v84_v21  ;;  %v102_v52 = vsel %vm472_vm4, %v99_v37, %v96_v36 }
  0x4b   :  { %v87_v29 = vmul.f32 %v238_v17, %v85_v22  ;;  %v111_v55 = vsel %vm480_vm5, %v108_v42, %v105_v41  ;;  %v120_v61 = vadd.f32 %v118_v50, %v102_v52 }
  0x4c   :  { %v90_v32 = vmul.f32 %v232_v11, %v86_v25  ;;  %v121_v0 = vadd.f32 %v119_v53, %v111_v55 }
  0x4d   :  { %v91_v35 = vmul.f32 %v234_v12, %v87_v29 }
  0x4e   :  { %v92_v39 = vsel %vm88_vm0, %v86_v25, %v90_v32 }
  0x4f   :  { %v93_v43 = vsel %vm89_vm1, %v87_v29, %v91_v35  ;;  %v122_v44 = vsub.f32 1.0, %v92_v39  ;;  %v128_v45 = vsel %vm112_vm2, %v92_v39, 0.0 }
  0x50   :  { %v123_v47 = vsub.f32 1.0, %v93_v43  ;;  %v143_v48 = vadd.f32 %v93_v43, %v92_v39  ;;  %v129_v49 = vsel %vm113_vm3, %v93_v43, 0.0 }
  0x51   :  { %v139_v51 = vadd.f32 %v129_v49, %v128_v45  ;;  %v124_v54 = vsel %vm112_vm2, %v92_v39, %v122_v44 }
  0x52   :  { %v125_v56 = vsel %vm113_vm3, %v93_v43, %v123_v47  ;;  %v130_v57 = vsub.f32 1.0, %v124_v54  ;;  %145 = vst [vmem:[#allocation8] sm:$0xff] %v143_v48 }
  0x53   :  { %v131_v60 = vsub.f32 1.0, %v125_v56  ;;  %141 = vst [vmem:[#allocation7] sm:$0xff] %v139_v51 }
  0x54   :  { %v132_v63 = vmul.f32 %v130_v57, %v130_v57 }
  0x55   :  { %v133_v1 = vmul.f32 %v131_v60, %v131_v60 }
  0x56   :  { %298 = shalt.err (!%p295_p6)
}
  0x57   :  { %s299_s24 = scalar_lea.hbm %s563_s3, 128 }
  0x58   :  { %p300_p7 = scmp.ne.s32.totalorder %s563_s3, %s299_s24  ;;  %p303_p8 = scmp.lt.u32.totalorder %s299_s24, %s563_s3 }
  0x5a   :  { %p305_p9 = pnand %p303_p8, %p300_p7 }
  0x5c   :  { %308 = shalt.err (!%p305_p9)
}
  0x5d   :  { %179 = dma.vmem_to_hbm [thread:$0]  %s177_s16, 128, %s563_s3, [#allocation9]   ;;  %v134_v2 = vmul.f32 %v132_v63, %v126_v59 }
  0x5e   :  { %s309_s6 = scalar_lea.vmem %s496_s18, 128  ;;  %p314_p11 = scmp.lt.s32.totalorder %s496_s18, %s496_s18 }
  0x5f   :  { %p310_p10 = scmp.ne.s32.totalorder %s496_s18, %s309_s6  ;;  %p315_p12 = scmp.lt.s32.totalorder %s309_s6, %s309_s6 }
  0x61   :  { %p316_p13 = por %p315_p12, %p314_p11 }
  0x63   :  { %p317_p0 = pnand %p316_p13, %p310_p10 }
  0x65   :  { %320 = shalt.err (!%p317_p0)
}
  0x66   :  { %s321_s9 = scalar_lea.hbm %s562_s2, 128 }
  0x67   :  { %p322_p1 = scmp.ne.s32.totalorder %s562_s2, %s321_s9  ;;  %p325_p2 = scmp.lt.u32.totalorder %s321_s9, %s562_s2 }
  0x69   :  { %p327_p3 = pnand %p325_p2, %p322_p1 }
  0x6b   :  { %330 = shalt.err (!%p327_p3)
}
  0x6c   :  { %166 = dma.vmem_to_hbm [thread:$0]  %s496_s18, 128, %s562_s2, [#allocation4]   ;;  %v135_v3 = vmul.f32 %v133_v1, %v127_v62 }
  0x6d   :  { %s331_s0 = scalar_lea.vmem %s500_s20, 128  ;;  %p336_p5 = scmp.lt.s32.totalorder %s500_s20, %s500_s20 }
  0x6e   :  { %p332_p4 = scmp.ne.s32.totalorder %s500_s20, %s331_s0  ;;  %p337_p6 = scmp.lt.s32.totalorder %s331_s0, %s331_s0 }
  0x70   :  { %p338_p7 = por %p337_p6, %p336_p5 }
  0x72   :  { %p339_p8 = pnand %p338_p7, %p332_p4 }
  0x74   :  { %342 = shalt.err (!%p339_p8)
}
  0x75   :  { %s343_s16 = scalar_lea.hbm %s564_s4, 128 }
  0x76   :  { %p344_p9 = scmp.ne.s32.totalorder %s564_s4, %s343_s16  ;;  %p347_p10 = scmp.lt.u32.totalorder %s343_s16, %s564_s4 }
  0x78   :  { %p349_p11 = pnand %p347_p10, %p344_p9 }
  0x7a   :  { %352 = shalt.err (!%p349_p11)
}
  0x7b   :  { %192 = dma.vmem_to_hbm [thread:$0]  %s500_s20, 128, %s564_s4, [#allocation9]   ;;  %v136_v4 = vmul.f32 %v134_v2, %v120_v61  ;;  %v137_v5 = vmul.f32 %v135_v3, %v121_v0 }
  0x7c   :  { %s391_s23 = smov [#allocation11]  }
  0x7d   :  { %s202_s24 = sshll.u32 %s391_s23, 4  ;;  %v151_v6 = vadd.f32 %v137_v5, %v136_v4  ;;  %s203_s24 = int_to_ptr.vmem [resolvable:$true] %s202_s24 }
  0x7e   :  { %s353_s25 = scalar_lea.vmem %s203_s24, 128  ;;  %p358_p13 = scmp.lt.s32.totalorder %s203_s24, %s203_s24 }
  0x7f   :  { %153 = vst [vmem:[#allocation11] sm:$0xff] %v151_v6  ;;  %p354_p12 = scmp.ne.s32.totalorder %s203_s24, %s353_s25  ;;  %p359_p0 = scmp.lt.s32.totalorder %s353_s25, %s353_s25 }
  0x81   :  { %p360_p1 = por %p359_p0, %p358_p13 }
  0x83   :  { %p361_p2 = pnand %p360_p1, %p354_p12 }
  0x85   :  { %364 = shalt.err (!%p361_p2)
}
  0x86   :  { %s365_s28 = scalar_lea.hbm %s565_s5, 128 }
  0x87   :  { %p366_p3 = scmp.ne.s32.totalorder %s565_s5, %s365_s28  ;;  %p369_p4 = scmp.lt.u32.totalorder %s365_s28, %s565_s5 }
  0x89   :  { %p371_p5 = pnand %p369_p4, %p366_p3 }
  0x8b   :  { %374 = shalt.err (!%p371_p5)
}
  0x8c   :  { %205 = dma.vmem_to_hbm [thread:$0]  %s203_s24, 128, %s565_s5, [#allocation12]  }
  0x8d   :  { %379 = dma.done.wait [#allocation4], 128  }
  0x8e   :  { %380 = vsyncadd [#allocation4], 4294967168 }
  0x8f   :  { %381 = dma.done.wait [#allocation9], 256  }
  0x90   :  { %382 = vsyncadd [#allocation9], 4294967040 }
  0x91   :  { %383 = dma.done.wait [#allocation12], 128  }
  0x92   :  { %384 = vsyncadd [#allocation12], 4294967168 }
  0x93   :  { %218 = vsyncpa [#allocation3], 1 }
  0x94   :  { %219 = vsyncpa [#allocation6], 1 }
  0x95   :  { %220 = vsyncpa [#allocation4], 1 }
  0x96   :  { %221 = vsyncpa [#allocation9], 1 }
  0x97   :  { %222 = vsyncpa [#allocation12], 1 }

</bundles_post_ra>
